<compile_context>
chip_gen: v7x
topology: tpu7x:2x2x1
jax: 0.10.0
libtpu: 0.0.40
codegen_flags: <defaults>
</compile_context>

<pallas_src>
import functools

import jax
import jax.numpy as jnp
from jax import lax
from jax.experimental import pallas as pl
from jax.experimental.pallas import tpu as pltpu


def _round_up(x, m):
    return ((x + m - 1) // m) * m


def _distill_kl_kernel(ys_ref, yt_ref, out_ref, *, inv_T, B, tile_b, ragged):
    i = pl.program_id(0)

    ys = ys_ref[...]
    yt = yt_ref[...]

    if ragged:
        # Zero padded rows of the (statically) ragged last tile so garbage from
        # the out-of-bounds block region can never reach exp/log.
        row_ids = i * tile_b + lax.broadcasted_iota(jnp.int32, (tile_b, 1), 0)
        valid = row_ids < B
        ys = jnp.where(valid, ys, jnp.zeros((), ys.dtype))
        yt = jnp.where(valid, yt, jnp.zeros((), yt.dtype))

    # Per-row max in the native input dtype (order-preserving; halves the XLU
    # sweep for bf16 inputs), then one f32 cast + scale by precomputed 1/T.
    ys_max = jnp.max(ys, axis=-1, keepdims=True).astype(jnp.float32)
    yt_max = jnp.max(yt, axis=-1, keepdims=True).astype(jnp.float32)
    ys_shift = (ys.astype(jnp.float32) - ys_max) * inv_T
    yt_shift = (yt.astype(jnp.float32) - yt_max) * inv_T

    e_t = jnp.exp(yt_shift)
    z_s = jnp.sum(jnp.exp(ys_shift), axis=-1, keepdims=True)
    z_t = jnp.sum(e_t, axis=-1, keepdims=True)

    # Fused per-row KL (uses sum(p_t) == 1):
    #   sum(p_t * (log p_t - log p_s))
    #     = sum(e_t * (yt_shift - ys_shift)) / z_t + (log z_s - log z_t)
    num = jnp.sum(e_t * (yt_shift - ys_shift), axis=-1, keepdims=True)
    row_kl = num * pl.reciprocal(z_t, approx=False) + (jnp.log(z_s) - jnp.log(z_t))

    if ragged:
        row_kl = jnp.where(valid, row_kl, 0.0)

    partial = jnp.sum(row_kl)

    # Lane-dense per-tile partial-sum output; wrapper reads [:, 0, 0].
    out_ref[...] = jnp.broadcast_to(partial, out_ref.shape).astype(jnp.float32)


def distill_kl(y_s, y_t, T, *, tile_b=None, vmem_limit_bytes=None):
    """Pallas implementation of DistillKL.forward. y_s, y_t: [B, C] logits."""
    assert y_s.shape == y_t.shape and y_s.ndim == 2
    B, C = y_s.shape
    itemsize = jnp.dtype(y_s.dtype).itemsize
    # Sublane multiple of the packed input dtype: 8 (f32), 16 (bf16), 32 (8-bit).
    sub = max(8, 32 // itemsize)

    # Generation-aware VMEM policy (v7x has only 64 MiB per TensorCore).
    try:
        vmem_cap = int(pltpu.get_tpu_info().vmem_capacity_bytes)
    except Exception:  # pragma: no cover - conservative fallback
        vmem_cap = 128 * 1024 * 1024
    small_vmem = vmem_cap <= 64 * 1024 * 1024

    if vmem_limit_bytes is None:
        vmem_limit_bytes = (40 if small_vmem else 64) * 1024 * 1024
    vmem_limit_bytes = int(vmem_limit_bytes)

    if tile_b is None:
        # Per-input block byte target (2-4 MiB already reaches ~85%+ of the HBM
        # roofline; v7x gets the smaller target, v5e/v6e the larger one).
        per_input_block = (3 if small_vmem else 6) * 1024 * 1024
        rows_by_block = per_input_block // max(1, C * itemsize)
        # Total-VMEM check: 2 inputs x 2 pipeline buffers in the native dtype
        # plus ~5 live full-tile f32 temporaries inside the kernel; keep the
        # total at <= ~60% of the scoped VMEM limit.
        per_row_bytes = 4 * C * itemsize + 5 * C * 4
        rows_by_vmem = int(0.6 * vmem_limit_bytes) // max(1, per_row_bytes)
        rows = min(rows_by_block, rows_by_vmem)
        if small_vmem and B > 4 * sub:
            # v7x: guarantee >= 4 grid steps so the "parallel" batch axis can
            # actually split across both TensorCores.
            rows = min(rows, _round_up(pl.cdiv(B, 4), sub))
        rows = max(sub, (rows // sub) * sub)
        tile_b = min(rows, _round_up(B, sub))
    else:
        tile_b = max(sub, _round_up(int(tile_b), sub))
        tile_b = min(tile_b, _round_up(B, sub))

    num_tiles = pl.cdiv(B, tile_b)
    ragged = (B % tile_b) != 0

    kernel = functools.partial(
        _distill_kl_kernel, inv_T=1.0 / float(T), B=B, tile_b=tile_b, ragged=ragged)

    partials = pl.pallas_call(
        kernel,
        out_shape=jax.ShapeDtypeStruct((num_tiles, 8, 128), jnp.float32),
        grid=(num_tiles,),
        in_specs=[
            pl.BlockSpec((tile_b, C), lambda i: (i, 0)),
            pl.BlockSpec((tile_b, C), lambda i: (i, 0)),
        ],
        out_specs=pl.BlockSpec((1, 8, 128), lambda i: (i, 0, 0)),
        compiler_params=pltpu.CompilerParams(
            dimension_semantics=("parallel",),
            vmem_limit_bytes=vmem_limit_bytes,
        ),
    )(y_s, y_t)

    # Finalize once in the wrapper: sum per-tile partials, scale by T^2 / batch.
    return jnp.sum(partials[:, 0, 0]) * (float(T) * float(T) / float(B))


def _distill_kl_ref(y_s, y_t, T):
    """Pure-JAX reference matching the PyTorch semantics."""
    log_p_s = jax.nn.log_softmax(y_s.astype(jnp.float32) / T, axis=1)
    p_t = jax.nn.softmax(y_t.astype(jnp.float32) / T, axis=1)
    log_p_t = jax.nn.log_softmax(y_t.astype(jnp.float32) / T, axis=1)
    kl = jnp.sum(p_t * (log_p_t - log_p_s))
    return kl * T**2 / y_s.shape[0]


if __name__ == "__main__":
    T = 4.0
    key = jax.random.PRNGKey(0)
    k1, k2, k3, k4, k5, k6 = jax.random.split(key, 6)

    # 1) Small shape straight from the module: [batch, num_classes] f32 logits.
    B, C = 8, 128
    y_s = jax.random.normal(k1, (B, C), dtype=jnp.float32)
    y_t = jax.random.normal(k2, (B, C), dtype=jnp.float32)
    out = jax.block_until_ready(distill_kl(y_s, y_t, T))
    ref = jax.block_until_ready(_distill_kl_ref(y_s, y_t, T))
    assert jnp.allclose(out, ref, rtol=1e-5, atol=1e-5), (out, ref)

    # 2) Multi-tile grid + ragged last tile (B % tile_b != 0), f32.
    B2, C2 = 12, 384
    y_s2 = jax.random.normal(k3, (B2, C2), dtype=jnp.float32)
    y_t2 = jax.random.normal(k4, (B2, C2), dtype=jnp.float32)
    out2 = jax.block_until_ready(distill_kl(y_s2, y_t2, T, tile_b=8))
    ref2 = jax.block_until_ready(_distill_kl_ref(y_s2, y_t2, T))
    assert jnp.allclose(out2, ref2, rtol=1e-5, atol=1e-5), (out2, ref2)

    # 3) bf16 fast path (half the HBM bytes), multi-tile + ragged last tile.
    B3, C3 = 20, 256
    y_s3 = jax.random.normal(k5, (B3, C3), dtype=jnp.float32).astype(jnp.bfloat16)
    y_t3 = jax.random.normal(k6, (B3, C3), dtype=jnp.float32).astype(jnp.bfloat16)
    out3 = jax.block_until_ready(distill_kl(y_s3, y_t3, T, tile_b=16))
    ref3 = jax.block_until_ready(_distill_kl_ref(y_s3, y_t3, T))
    assert jnp.allclose(out3, ref3, rtol=1e-4, atol=1e-5), (out3, ref3)

    print("KERNEL_OK")
</pallas_src>

<mosaic_0001>
module attributes {stable_mosaic.version = 11 : i64} {
  func.func @_distill_kl_kernel(%arg0: i32, %arg1: memref<8x128xf32, #tpu.memory_space<vmem>>, %arg2: memref<8x128xf32, #tpu.memory_space<vmem>>, %arg3: memref<1x8x128xf32, #tpu.memory_space<vmem>>) attributes {dimension_semantics = [#tpu.dimension_semantics<parallel>], iteration_bounds = array<i64: 1>, scalar_prefetch = 0 : i64, scratch_operands = 0 : i64, tpu.core_type = #tpu.core_type<tc>, window_params = [{transform_indices = @transform_0, window_bounds = array<i64: 8, 128>}, {transform_indices = @transform_1, window_bounds = array<i64: 8, 128>}, {transform_indices = @transform_2, window_bounds = array<i64: 1, 8, 128>}]} {
    %c0 = arith.constant 0 : index
    %c0_0 = arith.constant 0 : index
    %0 = vector.load %arg1[%c0, %c0_0] : memref<8x128xf32, #tpu.memory_space<vmem>>, vector<8x128xf32>
    %c0_1 = arith.constant 0 : index
    %c0_2 = arith.constant 0 : index
    %1 = vector.load %arg2[%c0_1, %c0_2] : memref<8x128xf32, #tpu.memory_space<vmem>>, vector<8x128xf32>
    %cst = arith.constant dense<0xFF800000> : vector<8xf32>
    %2 = vector.multi_reduction <maximumf>, %0, %cst [1] : vector<8x128xf32> to vector<8xf32>
    %3 = vector.shape_cast %2 : vector<8xf32> to vector<8x1xf32>
    %cst_3 = arith.constant dense<0xFF800000> : vector<8xf32>
    %4 = vector.multi_reduction <maximumf>, %1, %cst_3 [1] : vector<8x128xf32> to vector<8xf32>
    %5 = vector.shape_cast %4 : vector<8xf32> to vector<8x1xf32>
    %6 = vector.broadcast %3 : vector<8x1xf32> to vector<8x128xf32>
    %7 = arith.subf %0, %6 : vector<8x128xf32>
    %cst_4 = arith.constant 2.500000e-01 : f32
    %8 = vector.broadcast %cst_4 : f32 to vector<8x128xf32>
    %9 = arith.mulf %7, %8 : vector<8x128xf32>
    %10 = vector.broadcast %5 : vector<8x1xf32> to vector<8x128xf32>
    %11 = arith.subf %1, %10 : vector<8x128xf32>
    %cst_5 = arith.constant 2.500000e-01 : f32
    %12 = vector.broadcast %cst_5 : f32 to vector<8x128xf32>
    %13 = arith.mulf %11, %12 : vector<8x128xf32>
    %14 = math.exp %13 : vector<8x128xf32>
    %15 = math.exp %9 : vector<8x128xf32>
    %cst_6 = arith.constant dense<0.000000e+00> : vector<8xf32>
    %16 = vector.multi_reduction <add>, %15, %cst_6 [1] : vector<8x128xf32> to vector<8xf32>
    %17 = vector.shape_cast %16 : vector<8xf32> to vector<8x1xf32>
    %cst_7 = arith.constant dense<0.000000e+00> : vector<8xf32>
    %18 = vector.multi_reduction <add>, %14, %cst_7 [1] : vector<8x128xf32> to vector<8xf32>
    %19 = vector.shape_cast %18 : vector<8xf32> to vector<8x1xf32>
    %20 = arith.subf %13, %9 : vector<8x128xf32>
    %21 = arith.mulf %14, %20 : vector<8x128xf32>
    %cst_8 = arith.constant dense<0.000000e+00> : vector<8xf32>
    %22 = vector.multi_reduction <add>, %21, %cst_8 [1] : vector<8x128xf32> to vector<8xf32>
    %23 = vector.shape_cast %22 : vector<8xf32> to vector<8x1xf32>
    %24 = tpu.reciprocal %19 : vector<8x1xf32> -> vector<8x1xf32>
    %25 = arith.mulf %23, %24 : vector<8x1xf32>
    %26 = math.log %17 : vector<8x1xf32>
    %27 = math.log %19 : vector<8x1xf32>
    %28 = arith.subf %26, %27 : vector<8x1xf32>
    %29 = arith.addf %25, %28 : vector<8x1xf32>
    %30 = vector.shape_cast %29 : vector<8x1xf32> to vector<1x8x1xf32>
    %cst_9 = arith.constant dense<0.000000e+00> : vector<1xf32>
    %31 = vector.multi_reduction <add>, %30, %cst_9 [1, 2] : vector<1x8x1xf32> to vector<1xf32>
    %32 = vector.shape_cast %31 : vector<1xf32> to vector<1x1x1xf32>
    %33 = vector.extract %32[0, 0, 0] : f32 from vector<1x1x1xf32>
    %34 = vector.broadcast %33 : f32 to vector<1x8x128xf32>
    %c0_10 = arith.constant 0 : index
    %c0_11 = arith.constant 0 : index
    %c0_12 = arith.constant 0 : index
    %35 = vector.load %arg3[%c0_10, %c0_11, %c0_12] : memref<1x8x128xf32, #tpu.memory_space<vmem>>, vector<1x8x128xf32>
    tpu.vector_store %arg3[%c0_10, %c0_11, %c0_12], %34 {strides = array<i32>} : memref<1x8x128xf32, #tpu.memory_space<vmem>>, vector<1x8x128xf32>,
    return
  }
  func.func @transform_0(%arg0: i32) -> (i32, i32) {
    %c0_i32 = arith.constant 0 : i32
    %c0_i32_0 = arith.constant 0 : i32
    return %arg0, %c0_i32 : i32, i32
  }
  func.func @transform_1(%arg0: i32) -> (i32, i32) {
    %c0_i32 = arith.constant 0 : i32
    %c0_i32_0 = arith.constant 0 : i32
    return %arg0, %c0_i32 : i32, i32
  }
  func.func @transform_2(%arg0: i32) -> (i32, i32, i32) {
    %c0_i32 = arith.constant 0 : i32
    %c0_i32_0 = arith.constant 0 : i32
    %c0_i32_1 = arith.constant 0 : i32
    return %arg0, %c0_i32, %c0_i32_0 : i32, i32, i32
  }
}

</mosaic_0001>

<bundles_post_ra>
// kernel: tpu_custom_call.1
= control target key start
LH: loop header
LB: loop body
LE: loop exit
PB: predicated region body
PF: predicated region fallthrough
CT: control target
= control target key end

     0   :  { %7 = vsyncpa [#allocation3], 0  ;;  %s236_s0 = inlined_call_operand.hbm [shape: f32[8,128], index: 0, kind: input, shape index: {}]   ;;  %s237_s1 = inlined_call_operand.hbm [shape: f32[8,128], index: 1, kind: input, shape index: {}]   ;;  %s238_s2 = inlined_call_operand.hbm [shape: f32[1,8,128], index: 2, kind: output, shape index: {}]  }
   0x1   :  { %8 = vsyncpa [#allocation6], 0 }
   0x2   :  { %9 = vsyncpa [#allocation4], 0  ;;  %s182_s9 = smov [#allocation2]   ;;  %s183_s11 = smov [#allocation5]  }
   0x3   :  { %s16_s10 = sshll.u32 %s182_s9, 4  ;;  %s26_s12 = sshll.u32 %s183_s11, 4  ;;  %s17_s10 = int_to_ptr.vmem [resolvable:$true] %s16_s10  ;;  %s27_s12 = int_to_ptr.vmem [resolvable:$true] %s26_s12 }
   0x4   :  { %s110_s15 = scalar_lea.hbm %s236_s0, 128 }
   0x5   :  { %p111_p0 = scmp.ne.s32.totalorder %s236_s0, %s110_s15  ;;  %p114_p1 = scmp.lt.u32.totalorder %s110_s15, %s236_s0 }
   0x7   :  { %p116_p2 = pnand %p114_p1, %p111_p0 }
   0x9   :  { %119 = shalt.err (!%p116_p2)
}
   0xa   :  { %s120_s20 = scalar_lea.vmem %s17_s10, 128  ;;  %p125_p4 = scmp.lt.s32.totalorder %s17_s10, %s17_s10 }
   0xb   :  { %p121_p3 = scmp.ne.s32.totalorder %s17_s10, %s120_s20  ;;  %p126_p5 = scmp.lt.s32.totalorder %s120_s20, %s120_s20 }
   0xd   :  { %p127_p6 = por %p126_p5, %p125_p4 }
   0xf   :  { %p128_p7 = pnand %p127_p6, %p121_p3 }
  0x11   :  { %131 = shalt.err (!%p128_p7)
}
  0x12   :  { %19 = dma.hbm_to_vmem [thread:$0]  %s236_s0, 128, %s17_s10, [#allocation3]  }
  0x13   :  { %s132_s25 = scalar_lea.hbm %s237_s1, 128 }
  0x14   :  { %p133_p8 = scmp.ne.s32.totalorder %s237_s1, %s132_s25  ;;  %p136_p9 = scmp.lt.u32.totalorder %s132_s25, %s237_s1 }
  0x16   :  { %p138_p10 = pnand %p136_p9, %p133_p8 }
  0x18   :  { %141 = shalt.err (!%p138_p10)
}
  0x19   :  { %s142_s30 = scalar_lea.vmem %s27_s12, 128  ;;  %p147_p12 = scmp.lt.s32.totalorder %s27_s12, %s27_s12 }
  0x1a   :  { %p143_p11 = scmp.ne.s32.totalorder %s27_s12, %s142_s30  ;;  %p148_p13 = scmp.lt.s32.totalorder %s142_s30, %s142_s30 }
  0x1c   :  { %p149_p0 = por %p148_p13, %p147_p12 }
  0x1e   :  { %p150_p1 = pnand %p149_p0, %p143_p11 }
  0x20   :  { %153 = shalt.err (!%p150_p1)
}
  0x21   :  { %29 = dma.hbm_to_vmem [thread:$0]  %s237_s1, 128, %s27_s12, [#allocation6]  }
  0x22   :  { %176 = dma.done.wait [#allocation3], 128  }
  0x23   :  { %177 = vsyncadd [#allocation3], 4294967168 }
  0x24   :  { %178 = dma.done.wait [#allocation6], 128  }
  0x25   :  { %179 = vsyncadd [#allocation6], 4294967168  ;;  %v36_v0 = vld [vmem:[#allocation2] sm:$0xff]  ;;  %v37_v1 = vld [vmem:[#allocation5] sm:$0xff]  ;;  %vm66_vm0 = vcmask 7168   ;;  %s184_s1 = smov [#allocation7]  }
  0x26   :  { %38 = vmax.xlane.f32.xlu0 %v36_v0  ;;  %s85_s4 = sshll.u32 %s184_s1, 4  ;;  %s86_s4 = int_to_ptr.vmem [resolvable:$true] %s85_s4 }
  0x27   :  { %s154_s6 = scalar_lea.vmem %s86_s4, 128  ;;  %p159_p3 = scmp.lt.s32.totalorder %s86_s4, %s86_s4 }
  0x28   :  { %p155_p2 = scmp.ne.s32.totalorder %s86_s4, %s154_s6  ;;  %p160_p4 = scmp.lt.s32.totalorder %s154_s6, %s154_s6 }
  0x2a   :  { %40 = vmax.xlane.f32.xlu0 %v37_v1  ;;  %p161_p5 = por %p160_p4, %p159_p3 }
  0x2c   :  { %p162_p6 = pnand %p161_p5, %p155_p2 }
  0xb3   :  { %v39_v2 = vpop.xlane.xlu0 %38 }
  0xb4   :  { %v42_v3 = vsub.f32 %v36_v0, %v39_v2 }
  0xb6   :  { %v43_v4 = vmul.f32 0.25, %v42_v3 }
  0xb7   :  { %v41_v5 = vpop.xlane.xlu0 %40 }
  0xb8   :  { %v44_v6 = vsub.f32 %v37_v1, %v41_v5  ;;  %v48_v7 = vmul.f32 1.442695, %v43_v4 }
  0xba   :  { %v45_v8 = vmul.f32 0.25, %v44_v6  ;;  %100 = vpow2.f32 %v48_v7 }
  0xbc   :  { %v46_v9 = vmul.f32 1.442695, %v45_v8  ;;  %v54_v11 = vsub.f32 %v45_v8, %v43_v4 }
  0xbe   :  { %102 = vpow2.f32 %v46_v9 }
  0xc4   :  { %v101_v10 = vpop.eup %100 }
  0xc5   :  { %50 = vadd.xlane.f32.xlu1 %v101_v10 }
  0xc8   :  { %v103_v12 = vpop.eup %102 }
  0xc9   :  { %52 = vadd.xlane.f32.xlu1 %v103_v12  ;;  %v55_v13 = vmul.f32 %v103_v12, %v54_v11 }
  0xcb   :  { %56 = vadd.xlane.f32.xlu0 %v55_v13 }
 0x152   :  { %v51_v14 = vpop.xlane.xlu1 %50 }
 0x153   :  { %104 = vlog2.f32 %v51_v14 }
 0x156   :  { %v53_v15 = vpop.xlane.xlu1 %52 }
 0x157   :  { %106 = vrcp.f32 %v53_v15 }
 0x158   :  { %108 = vlog2.f32 %v53_v15  ;;  %v57_v21 = vpop.xlane.xlu0 %56 }
 0x15d   :  { %v105_v16 = vpop.eup %104 }
 0x15e   :  { %v61_v19 = vmul.f32 0.6931472, %v105_v16 }
 0x161   :  { %v107_v17 = vpop.eup %106 }
 0x162   :  { %v109_v18 = vpop.eup %108  ;;  %v59_v22 = vmul.f32 %v107_v17, %v57_v21 }
 0x163   :  { %v63_v20 = vmul.f32 0.6931472, %v109_v18 }
 0x165   :  { %v64_v23 = vsub.f32 %v61_v19, %v63_v20 }
 0x167   :  { %v65_v24 = vadd.f32 %v64_v23, %v59_v22 }
 0x169   :  { %v67_v25 = vsel %vm66_vm0, %v65_v24, 0.0 }
 0x16a   :  { %68 = vadd.xlane.f32.xlu1 %v67_v25 }
 0x1f7   :  { %v69_v26 = vpop.xlane.xlu1 %68 }
 0x1f8   :  { %v70_v27 = vrot.slane %v69_v26, 4 }
 0x1fa   :  { %v71_v28 = vadd.f32 %v70_v27, %v69_v26 }
 0x1fc   :  { %v72_v29 = vrot.slane %v71_v28, 2 }
 0x1fe   :  { %v73_v30 = vadd.f32 %v72_v29, %v71_v28 }
 0x200   :  { %v74_v31 = vrot.slane %v73_v30, 1 }
 0x202   :  { %v75_v32 = vadd.f32 %v74_v31, %v73_v30 }
 0x204   :  { %95 = vpush %v75_v32 }
 0x235   :  { %s96_s5 = spop %95 }
 0x236   :  { %v77_v33 = vstv %s96_s5 }
 0x237   :  { %78 = vst [vmem:[#allocation7] sm:$0xff] %v77_v33 }
 0x238   :  { %165 = shalt.err (!%p162_p6)
}
 0x239   :  { %s166_s9 = scalar_lea.hbm %s238_s2, 128 }
 0x23a   :  { %p167_p7 = scmp.ne.s32.totalorder %s238_s2, %s166_s9  ;;  %p170_p8 = scmp.lt.u32.totalorder %s166_s9, %s238_s2 }
 0x23c   :  { %p172_p9 = pnand %p170_p8, %p167_p7 }
 0x23e   :  { %175 = shalt.err (!%p172_p9)
}
 0x23f   :  { %88 = dma.vmem_to_hbm [thread:$0]  %s86_s4, 128, %s238_s2, [#allocation4]  }
 0x240   :  { %180 = dma.done.wait [#allocation4], 128  }
 0x241   :  { %181 = vsyncadd [#allocation4], 4294967168 }
 0x242   :  { %92 = vsyncpa [#allocation3], 1 }
 0x243   :  { %93 = vsyncpa [#allocation6], 1 }
 0x244   :  { %94 = vsyncpa [#allocation4], 1 }

</bundles_post_ra>
